<compile_context>
chip_gen: v7x
topology: tpu7x:2x2x1
jax: 0.10.0
libtpu: 0.0.40
codegen_flags: <defaults>
</compile_context>

<pallas_src>
import jax
import jax.numpy as jnp
from jax.experimental import pallas as pl
from jax.experimental.pallas import tpu as pltpu

K_SIZE = 41          # k_size in the torch module
ALPHA = 2 ** 4       # alpha = 16 (Python int -> lax.integer_pow, not exp/log)


def _check_length(n):
    if n % 2 == 0:
        raise ValueError("input length must be odd so (k_size - N) is even")
    if n > K_SIZE - 4:
        raise ValueError("input length must be <= 37 (right pad would be negative)")


# ----------------------------------------------------------------------------
# Single-signal kernel (exactly the torch module's forward): gridless call.
# ----------------------------------------------------------------------------
def flat_dilation_kernel(inv_scale_ref, x_ref, out_ref):
    """inv_scale_ref: f32[1] in SMEM (1/scale); x_ref: f32[N, 1] in VMEM
    (input sample i on sublanes); out_ref: f32[1, N] in VMEM (output shift x
    on lanes -> lane-dense store)."""
    n = out_ref.shape[1]
    left = (K_SIZE - n) // 2 + 2          # static, derived from the block shape
    inv_s = inv_scale_ref[0]

    # rows (sublanes) = input sample i, cols (lanes) = output shift x.
    i_iota = jax.lax.broadcasted_iota(jnp.int32, (n, n), 0)
    x_iota = jax.lax.broadcasted_iota(jnp.int32, (n, n), 1)

    # Structuring-element tap hit by input sample i at output shift x:
    #   j = (i + left - x) mod K_SIZE.
    # d lies in (-K_SIZE, K_SIZE), so one conditional wrap replaces the
    # non-power-of-two modulo; for N <= 15 it cannot trigger and is elided.
    d = i_iota + left - x_iota
    if left < n - 1:
        d = jnp.where(d < 0, d + K_SIZE, d)

    z = (d - K_SIZE // 2).astype(jnp.float32)       # z_j = j - 20
    h = -((z * inv_s) ** ALPHA)                     # -(z/scale)^alpha

    vals = x_ref[...] + h                           # (N,1) lane-bcast -> (N,N)
    # Sublane reduce -> lane-dense (1, N) row: a few VPU vmax + a short
    # sublane tree instead of a 128-lane XLU reduce + masked column stores.
    out_ref[...] = jnp.max(vals, axis=0, keepdims=True)


def flat_dilation_1d(x, scale):
    """Pallas version of FlatDilation1D.forward for one 1-D signal of odd
    length N <= 37 (same constraint the torch pad arithmetic imposes).
    For scale < ~0.08, (z/scale)^16 overflows f32 to inf (h = -inf), matching
    the f32 torch reference."""
    n = x.shape[0]
    _check_length(n)

    x_col = x.astype(jnp.float32).reshape(n, 1)                      # free reshape
    inv_scale = (1.0 / jnp.asarray(scale, jnp.float32)).reshape(1)   # scalar -> SMEM

    out = pl.pallas_call(
        flat_dilation_kernel,
        out_shape=jax.ShapeDtypeStruct((1, n), jnp.float32),
        in_specs=[
            pl.BlockSpec(memory_space=pltpu.MemorySpace.SMEM),   # 1/scale
            pl.BlockSpec(memory_space=pltpu.MemorySpace.VMEM),   # x as (N, 1)
        ],
        out_specs=pl.BlockSpec(memory_space=pltpu.MemorySpace.VMEM),
    )(inv_scale, x_col)
    return out.reshape(n)


# ----------------------------------------------------------------------------
# Batched kernel: many independent signals per pallas_call (the only
# order-of-magnitude lever for this tiny op).
# ----------------------------------------------------------------------------
def _structuring_row(i, left, n, inv_s):
    """h_i[x] = -(((i + left - x) mod K - 20) / scale)^alpha as a (1, N) row.
    i, left are Python ints; the mod collapses to at most one conditional
    wrap, elided when it cannot trigger."""
    x_iota = jax.lax.broadcasted_iota(jnp.int32, (1, n), 1)
    d = (i + left) - x_iota
    if i + left - (n - 1) < 0:
        d = jnp.where(d < 0, d + K_SIZE, d)
    z = (d - K_SIZE // 2).astype(jnp.float32)
    return -((z * inv_s) ** ALPHA)


def flat_dilation_batched_kernel(inv_scale_ref, xt_ref, out_ref):
    """xt_ref: f32[N, BT, 1] (input sample i on the leading axis, batch on
    sublanes); out_ref: f32[BT, N] (batch on sublanes, output shift on lanes).

    out[b, x] = max_i ( x[b, i] + h[(i + left - x) mod K] ), evaluated as a
    statically unrolled fold over i (<= 37 steps): slab load + broadcast add +
    elementwise vmax on a lane-dense (BT, N) tile -- pure VPU work."""
    n = out_ref.shape[1]
    left = (K_SIZE - n) // 2 + 2
    inv_s = inv_scale_ref[0]

    acc = None
    for i in range(n):
        h_i = _structuring_row(i, left, n, inv_s)       # (1, N)
        contrib = xt_ref[i] + h_i                       # (BT,1)+(1,N) -> (BT,N)
        acc = contrib if acc is None else jnp.maximum(acc, contrib)
    out_ref[...] = acc


def flat_dilation_1d_batched(xb, scale, *, block_b=256):
    """Apply FlatDilation1D independently to every row of xb: (B, N) -> (B, N).

    One pallas_call, grid over batch tiles, batch axis "parallel" (uses both
    TensorCores on v7x; no-op on v5e/v6e).  The default tile keeps the working
    set tiny (<< v7x's 64 MiB VMEM) while amortizing per-grid-step overhead."""
    b, n = xb.shape
    _check_length(n)

    bt = min(int(block_b), ((b + 7) // 8) * 8)
    bt = max(8, (bt // 8) * 8)                  # sublane dim: multiple of 8
    bp = ((b + bt - 1) // bt) * bt

    xb_f = xb.astype(jnp.float32)
    if bp != b:
        xb_f = jnp.pad(xb_f, ((0, bp - b), (0, 0)))     # finite pad rows, sliced off
    # (B, N) -> (N, B, 1): input-sample index on the leading axis so the kernel
    # folds over it with plain slab loads (no in-kernel transpose/gather).
    xt = jnp.transpose(xb_f, (1, 0)).reshape(n, bp, 1)
    inv_scale = (1.0 / jnp.asarray(scale, jnp.float32)).reshape(1)

    out = pl.pallas_call(
        flat_dilation_batched_kernel,
        out_shape=jax.ShapeDtypeStruct((bp, n), jnp.float32),
        grid=(bp // bt,),
        in_specs=[
            pl.BlockSpec(memory_space=pltpu.MemorySpace.SMEM),   # 1/scale
            pl.BlockSpec((n, bt, 1), lambda j: (0, j, 0)),       # x^T batch tile
        ],
        out_specs=pl.BlockSpec((bt, n), lambda j: (j, 0)),       # lane-dense rows
        compiler_params=pltpu.CompilerParams(
            dimension_semantics=("parallel",)),
    )(inv_scale, xt)
    return out[:b]


if __name__ == "__main__":
    N = 9                      # odd => (K_SIZE - N) even, matching torch pad math
    scale = 3.0                # deterministic value of the `scale` Parameter
    key = jax.random.PRNGKey(0)
    k1, k2 = jax.random.split(key)
    x = jax.random.normal(k1, (N,), dtype=jnp.float32)

    # Pure-JAX reference mirroring the torch loop (pad -inf + roll + add + max).
    z = jnp.arange(K_SIZE, dtype=jnp.float32) - (K_SIZE // 2)
    h = -((z / scale) ** ALPHA)
    missing = K_SIZE - N

    def ref_one(v):
        padded = jnp.pad(v, (missing // 2 + 2, missing // 2 - 2),
                         constant_values=-jnp.inf)
        return jnp.stack([jnp.max(jnp.roll(padded, -i) + h) for i in range(N)])

    # Single-signal kernel (the module's exact forward).
    fwd = jax.jit(flat_dilation_1d)
    out = jax.block_until_ready(fwd(x, scale))
    ref = ref_one(x)
    assert jnp.allclose(out, ref, rtol=1e-5, atol=1e-5), (out, ref)

    # Batched kernel (many signals per pallas_call).
    B = 8
    xb = jax.random.normal(k2, (B, N), dtype=jnp.float32)
    fwd_b = jax.jit(flat_dilation_1d_batched)
    out_b = jax.block_until_ready(fwd_b(xb, scale))
    ref_b = jax.vmap(ref_one)(xb)
    assert jnp.allclose(out_b, ref_b, rtol=1e-5, atol=1e-5), (out_b, ref_b)

    print("KERNEL_OK")
</pallas_src>

<mosaic_0001>
module attributes {stable_mosaic.version = 11 : i64} {
  func.func @flat_dilation_kernel(%arg0: memref<1xf32, #tpu.memory_space<smem>>, %arg1: memref<9x1xf32, #tpu.memory_space<vmem>>, %arg2: memref<1x9xf32, #tpu.memory_space<vmem>>) attributes {dimension_semantics = [], scalar_prefetch = 0 : i64, scratch_operands = 0 : i64, tpu.core_type = #tpu.core_type<tc>} {
    %c0 = arith.constant 0 : index
    %0 = memref.load %arg0[%c0] : memref<1xf32, #tpu.memory_space<smem>>
    %1 = tpu.iota {dimensions = array<i32: 0>} : vector<9x9xi32>
    %2 = tpu.iota {dimensions = array<i32: 1>} : vector<9x9xi32>
    %c18_i32 = arith.constant 18 : i32
    %3 = vector.broadcast %c18_i32 : i32 to vector<9x9xi32>
    %4 = arith.addi %1, %3 : vector<9x9xi32>
    %5 = arith.subi %4, %2 : vector<9x9xi32>
    %c20_i32 = arith.constant 20 : i32
    %6 = vector.broadcast %c20_i32 : i32 to vector<9x9xi32>
    %7 = arith.subi %5, %6 : vector<9x9xi32>
    %8 = arith.sitofp %7 : vector<9x9xi32> to vector<9x9xf32>
    %9 = vector.broadcast %0 : f32 to vector<9x9xf32>
    %10 = arith.mulf %8, %9 : vector<9x9xf32>
    %11 = arith.mulf %10, %10 : vector<9x9xf32>
    %12 = arith.mulf %11, %11 : vector<9x9xf32>
    %13 = arith.mulf %12, %12 : vector<9x9xf32>
    %14 = arith.mulf %13, %13 : vector<9x9xf32>
    %cst = arith.constant 0.000000e+00 : f32
    %15 = vector.broadcast %cst : f32 to vector<9x9xf32>
    %16 = arith.subf %15, %14 : vector<9x9xf32>
    %c0_0 = arith.constant 0 : index
    %c0_1 = arith.constant 0 : index
    %17 = vector.load %arg1[%c0_0, %c0_1] : memref<9x1xf32, #tpu.memory_space<vmem>>, vector<9x1xf32>
    %18 = vector.broadcast %17 : vector<9x1xf32> to vector<9x9xf32>
    %19 = arith.addf %18, %16 : vector<9x9xf32>
    %cst_2 = arith.constant dense<0xFF800000> : vector<9xf32>
    %20 = vector.multi_reduction <maximumf>, %19, %cst_2 [0] : vector<9x9xf32> to vector<9xf32>
    %21 = vector.shape_cast %20 : vector<9xf32> to vector<1x9xf32>
    %c0_3 = arith.constant 0 : index
    %c0_4 = arith.constant 0 : index
    %22 = vector.load %arg2[%c0_3, %c0_4] : memref<1x9xf32, #tpu.memory_space<vmem>>, vector<1x9xf32>
    tpu.vector_store %arg2[%c0_3, %c0_4], %21 {strides = array<i32>} : memref<1x9xf32, #tpu.memory_space<vmem>>, vector<1x9xf32>,
    return
  }
}

</mosaic_0001>

<bundles_post_ra>
// kernel: flat_dilation_1d.1
= control target key start
LH: loop header
LB: loop body
LE: loop exit
PB: predicated region body
PF: predicated region fallthrough
CT: control target
= control target key end

     0   :  { %v109_v1 = vmov 0   ;;  %s147_s0 = inlined_call_operand.<no memory space> [shape: f32[1], index: 0, kind: input, shape index: {}]   ;;  %s148_s1 = inlined_call_operand.vmem [shape: f32[9,1], index: 1, kind: input, shape index: {}]   ;;  %s149_s2 = inlined_call_operand.hbm [shape: f32[1,9], index: 2, kind: output, shape index: {}]  }
   0x1   :  { %v40_v0 = vld [vmem:[%s148_s1] sm:$0xff]  ;;  %84 = vset.pattern.permute.xlu0 %v109_v1 }
   0x2   :  { %8 = vsyncpa [#allocation4], 0  ;;  %44 = vperm.xlu0 %84, %v40_v0   ;;  %v41_v2 = vld [vmem:[%s148_s1 + $0x8] sm:$0x1]  ;;  %v14_v3 = vlaneseq  ;;  %v27_v14 = vstv %s147_s0  ;;  %vm54_vm0 = vcmask 72704   ;;  %vm56_vm1 = vcmask 65536  }
   0x3   :  { %s110_s0 = smov [#allocation3]  }
   0x4   :  { %v15_v4 = vshrl.u32 %v14_v3, 7  ;;  %v18_v6 = vand.u32 127, %v14_v3  ;;  %s72_s1 = sshll.u32 %s110_s0, 4  ;;  %s73_s1 = int_to_ptr.vmem [resolvable:$true] %s72_s1 }
   0x5   :  { %s85_s15 = scalar_lea.vmem %s73_s1, 16  ;;  %s89_s16 = scalar_lea.vmem %s73_s1, 32 }
   0x6   :  { %49 = vperm.xlu0 %84, %v41_v2   ;;  %v16_v5 = vadd.s32 8, %v15_v4  ;;  %v19_v7 = vadd.s32 18, %v15_v4  ;;  %p86_p0 = scmp.ne.s32.totalorder %s73_s1, %s85_s15  ;;  %p90_p1 = scmp.lt.s32.totalorder %s73_s1, %s73_s1 }
   0x7   :  { %p91_p2 = scmp.lt.s32.totalorder %s89_s16, %s85_s15 }
   0x8   :  { %v20_v8 = vadd.s32 18, %v16_v5  ;;  %v21_v9 = vsub.s32 %v19_v7, %v18_v6 }
   0x9   :  { %p92_p3 = por %p91_p2, %p90_p1 }
   0xa   :  { %v22_v10 = vsub.s32 %v20_v8, %v18_v6  ;;  %v80_v11 = vadd.s32 4294967276, %v21_v9 }
   0xb   :  { %p93_p4 = pnand %p92_p3, %p86_p0 }
   0xc   :  { %v81_v12 = vadd.s32 4294967276, %v22_v10  ;;  %v25_v13 = vcvt.s32.f32 %v80_v11 }
   0xe   :  { %v26_v15 = vcvt.s32.f32 %v81_v12  ;;  %v28_v16 = vmul.f32 %v27_v14, %v25_v13 }
  0x10   :  { %v29_v17 = vmul.f32 %v27_v14, %v26_v15  ;;  %v30_v18 = vmul.f32 %v28_v16, %v28_v16 }
  0x12   :  { %v31_v19 = vmul.f32 %v29_v17, %v29_v17  ;;  %v32_v20 = vmul.f32 %v30_v18, %v30_v18 }
  0x14   :  { %v33_v21 = vmul.f32 %v31_v19, %v31_v19  ;;  %v34_v22 = vmul.f32 %v32_v20, %v32_v20 }
  0x16   :  { %v35_v23 = vmul.f32 %v33_v21, %v33_v21  ;;  %v36_v24 = vmul.f32 %v34_v22, %v34_v22 }
  0x18   :  { %v37_v25 = vmul.f32 %v35_v23, %v35_v23  ;;  %v38_v26 = vsub.f32 0.0, %v36_v24 }
  0x1a   :  { %v39_v28 = vsub.f32 0.0, %v37_v25 }
  0x81   :  { %v45_v27 = vpop.permute.xlu0 %44 }
  0x82   :  { %v52_v29 = vadd.f32 %v45_v27, %v38_v26 }
  0x84   :  { %v55_v32 = vsel %vm54_vm0, %v52_v29, -inf }
  0x85   :  { %v50_v30 = vpop.permute.xlu0 %49 }
  0x86   :  { %v53_v31 = vadd.f32 %v50_v30, %v39_v28 }
  0x88   :  { %v57_v33 = vsel %vm56_vm1, %v53_v31, -inf }
  0x89   :  { %v58_v34 = vmax.f32 %v55_v32, %v57_v33 }
  0x8b   :  { %v59_v35 = vrot.slane %v58_v34, 4 }
  0x8d   :  { %v60_v36 = vmax.f32 %v58_v34, %v59_v35 }
  0x8f   :  { %v61_v37 = vrot.slane %v60_v36, 2 }
  0x91   :  { %v62_v38 = vmax.f32 %v60_v36, %v61_v37 }
  0x93   :  { %v63_v39 = vrot.slane %v62_v38, 1 }
  0x95   :  { %v64_v40 = vmax.f32 %v62_v38, %v63_v39 }
  0x97   :  { %65 = vst.msk [vmem:[#allocation3] sm:$0x1] %vm56_vm1, %v64_v40 }
  0x98   :  { %96 = shalt.err (!%p93_p4)
}
  0x99   :  { %s97_s19 = scalar_lea.hbm %s149_s2, 16 }
  0x9a   :  { %p98_p5 = scmp.ne.s32.totalorder %s149_s2, %s97_s19  ;;  %p101_p6 = scmp.lt.u32.totalorder %s97_s19, %s149_s2 }
  0x9c   :  { %p103_p7 = pnand %p101_p6, %p98_p5 }
  0x9e   :  { %106 = shalt.err (!%p103_p7)
}
  0x9f   :  { %75 = dma.vmem_to_hbm [thread:$0]  %s73_s1, 16, %s149_s2, [#allocation4]  }
  0xa0   :  { %107 = dma.done.wait [#allocation4], 16  }
  0xa1   :  { %108 = vsyncadd [#allocation4], 4294967280 }
  0xa2   :  { %79 = vsyncpa [#allocation4], 1 }

</bundles_post_ra>
